<compile_context>
chip_gen: v7x
topology: tpu7x:2x2x1
jax: 0.10.0
libtpu: 0.0.40
codegen_flags: <defaults>
</compile_context>

<pallas_src>
import functools

import jax
import jax.numpy as jnp
from jax import lax
from jax.experimental import pallas as pl
from jax.experimental.pallas import tpu as pltpu


# Squeezed sentinel (falls back to the classic `None` block-dim on older jax).
_SQ = pl.Squeezed() if hasattr(pl, "Squeezed") else None

_NEG_BIG = jnp.finfo(jnp.float32).min


# ----------------------------------------------------------------------------
# Hardware-aware knobs
# ----------------------------------------------------------------------------
@functools.lru_cache(maxsize=None)
def _vmem_capacity_bytes():
    try:
        info = pltpu.get_tpu_info()
        for attr in ("vmem_capacity_bytes", "vmem_size_bytes", "vmem_bytes"):
            val = getattr(info, attr, None)
            if val:
                return int(val)
    except Exception:
        pass
    return 64 * 1024 * 1024  # conservative default (v7x-sized)


def _vmem_limit_bytes():
    cap = _vmem_capacity_bytes()
    return min(int(cap * 0.7), 100 * 1024 * 1024)


def _matmul_tile_targets():
    if _vmem_capacity_bytes() >= 100 * 1024 * 1024:   # v5e / v6e (128 MiB)
        return 512, 512, 512
    return 256, 256, 512                               # v7x (64 MiB)


def _round_up(x, m):
    return -(-x // m) * m


def _pick_tile(dim, target):
    """Largest power-of-two tile <= target that divides dim (or dim if small)."""
    if dim <= target:
        return dim
    t = target
    while t >= 8:
        if dim % t == 0:
            return t
        t //= 2
    # TODO(synk): pad the query axis for sequence lengths with no 8-aligned divisor.
    return 8 if dim % 8 == 0 else dim


def _fit_matmul_dim(dim, target):
    """Return (tile, padded_dim); never returns a huge full-dim tile."""
    if dim <= target:
        return dim, dim
    if dim % target == 0:
        return target, dim
    return target, _round_up(dim, target)


# ----------------------------------------------------------------------------
# Tiled matmul kernel:  y = x @ w_t      (w_t already transposed to [K, N])
# ----------------------------------------------------------------------------
def _matmul_kernel(x_ref, w_ref, o_ref, acc_ref):
    @pl.when(pl.program_id(2) == 0)
    def _init():
        acc_ref[...] = jnp.zeros_like(acc_ref)

    acc_ref[...] += jnp.dot(
        x_ref[...], w_ref[...], preferred_element_type=jnp.float32
    )

    @pl.when(pl.program_id(2) == pl.num_programs(2) - 1)
    def _store():
        o_ref[...] = acc_ref[...].astype(o_ref.dtype)


def matmul(x, w_t, *, out_dtype=None, compute_dtype=None):
    """x: [M, K], w_t: [K, N] (pre-transposed from PyTorch's [N, K])."""
    m, k = x.shape
    k2, n = w_t.shape
    assert k == k2, (x.shape, w_t.shape)
    out_dtype = out_dtype or x.dtype
    if compute_dtype is not None:
        x = x.astype(compute_dtype)
        w_t = w_t.astype(compute_dtype)

    tm_t, tn_t, tk_t = _matmul_tile_targets()
    tm, mp = _fit_matmul_dim(m, tm_t)
    tn, np_ = _fit_matmul_dim(n, tn_t)
    tk, kp = _fit_matmul_dim(k, tk_t)

    if (mp, kp) != (m, k):
        x = jnp.pad(x, ((0, mp - m), (0, kp - k)))
    if (kp, np_) != (k, n):
        w_t = jnp.pad(w_t, ((0, kp - k), (0, np_ - n)))

    out = pl.pallas_call(
        _matmul_kernel,
        out_shape=jax.ShapeDtypeStruct((mp, np_), out_dtype),
        grid_spec=pltpu.PrefetchScalarGridSpec(
            num_scalar_prefetch=0,
            grid=(mp // tm, np_ // tn, kp // tk),
            in_specs=[
                pl.BlockSpec((tm, tk), lambda i, j, kk: (i, kk)),
                pl.BlockSpec((tk, tn), lambda i, j, kk: (kk, j)),
            ],
            out_specs=pl.BlockSpec((tm, tn), lambda i, j, kk: (i, j)),
            scratch_shapes=[pltpu.VMEM((tm, tn), jnp.float32)],
        ),
        compiler_params=pltpu.CompilerParams(
            dimension_semantics=("parallel", "parallel", "arbitrary"),
            vmem_limit_bytes=_vmem_limit_bytes(),
        ),
    )(x, w_t)

    if (mp, np_) != (m, n):
        out = out[:m, :n]
    return out


# ----------------------------------------------------------------------------
# Full-key attention kernel (used when output_attentions=True, or small S)
# ----------------------------------------------------------------------------
def _attn_full_kernel(q_ref, k_ref, v_ref, ov_ref, ovm_ref, *out_refs,
                      tq, ov_len, approx_recip, with_weights):
    if with_weights:
        out_ref, w_ref = out_refs
    else:
        (out_ref,) = out_refs

    s = k_ref.shape[0]
    q = q_ref[...]                       # [TQ, D]  (already scaled, compute dtype)
    k = k_ref[...]                       # [S,  D]
    v = v_ref[...]                       # [S,  D]

    # scores = q @ k^T (contract last dims; no explicit transpose).
    scores = lax.dot_general(
        q, k, (((1,), (1,)), ((), ())), preferred_element_type=jnp.float32
    )                                    # [TQ, S]

    q0 = pl.program_id(1) * tq
    row = q0 + lax.broadcasted_iota(jnp.int32, (tq, s), 0)
    col = lax.broadcasted_iota(jnp.int32, (tq, s), 1)
    scores = jnp.where(col <= row, scores, _NEG_BIG)

    scores = scores - jnp.max(scores, axis=-1, keepdims=True)
    p = jnp.exp(scores)
    denom = jnp.sum(p, axis=-1, keepdims=True)
    weights = p * pl.reciprocal(denom, approx=approx_recip)       # [TQ, S]

    # Post-softmax override: one full-width select, gated by "this query tile
    # overlaps the override region" (padded ovm is zero outside [:L,:L]).
    use_ov = jnp.logical_and(ovm_ref[...] != 0, q0 < ov_len)
    weights = jnp.where(use_ov, ov_ref[...], weights)

    out = jnp.dot(weights.astype(v.dtype), v, preferred_element_type=jnp.float32)
    out_ref[...] = out.astype(out_ref.dtype)
    if with_weights:
        w_ref[...] = weights.astype(w_ref.dtype)


def attention_full(q, k, v, ov, ovm, *, num_heads, merged_out, out_dtype,
                   output_attentions, approx_recip,
                   attn_weights_dtype=jnp.float32, tq=None):
    # q, k, v : [BH, S, D] (q pre-scaled, compute dtype)
    # ov      : [BH, L, L] float32, ovm: [BH, L, L] bool-ish
    bh, s, d = q.shape
    l = ov.shape[-1]
    if tq is None:
        tq = _pick_tile(s, 256 if _vmem_capacity_bytes() >= 100 * 2**20 else 128)

    lq_pad = _round_up(l, tq)
    ov_p = jnp.pad(ov.astype(jnp.float32), ((0, 0), (0, lq_pad - l), (0, s - l)))
    ovm_p = jnp.pad(ovm.astype(jnp.int8), ((0, 0), (0, lq_pad - l), (0, s - l)))
    nq_ov = lq_pad // tq
    h = num_heads

    kernel = functools.partial(
        _attn_full_kernel, tq=tq, ov_len=l, approx_recip=approx_recip,
        with_weights=output_attentions,
    )

    in_specs = [
        pl.BlockSpec((_SQ, tq, d), lambda i, qt: (i, qt, 0)),                 # q tile
        pl.BlockSpec((_SQ, s, d), lambda i, qt: (i, 0, 0)),                   # full K
        pl.BlockSpec((_SQ, s, d), lambda i, qt: (i, 0, 0)),                   # full V
        pl.BlockSpec((_SQ, tq, s),
                     lambda i, qt: (i, jnp.minimum(qt, nq_ov - 1), 0)),       # override
        pl.BlockSpec((_SQ, tq, s),
                     lambda i, qt: (i, jnp.minimum(qt, nq_ov - 1), 0)),       # override mask
    ]

    if merged_out:
        b = bh // h
        ctx_shape = jax.ShapeDtypeStruct((b, s, h * d), out_dtype)
        ctx_spec = pl.BlockSpec((_SQ, tq, d), lambda i, qt: (i // h, qt, i % h))
    else:
        ctx_shape = jax.ShapeDtypeStruct((bh, s, d), out_dtype)
        ctx_spec = pl.BlockSpec((_SQ, tq, d), lambda i, qt: (i, qt, 0))

    if output_attentions:
        out_shape = (ctx_shape, jax.ShapeDtypeStruct((bh, s, s), attn_weights_dtype))
        out_specs = (ctx_spec, pl.BlockSpec((_SQ, tq, s), lambda i, qt: (i, qt, 0)))
    else:
        out_shape = ctx_shape
        out_specs = ctx_spec

    res = pl.pallas_call(
        kernel,
        out_shape=out_shape,
        grid_spec=pltpu.PrefetchScalarGridSpec(
            num_scalar_prefetch=0,
            grid=(bh, s // tq),
            in_specs=in_specs,
            out_specs=out_specs,
        ),
        compiler_params=pltpu.CompilerParams(
            dimension_semantics=("parallel", "parallel"),
            vmem_limit_bytes=_vmem_limit_bytes(),
        ),
    )(q, k, v, ov_p, ovm_p)

    if output_attentions:
        return res
    return res, None


# ----------------------------------------------------------------------------
# Flash (key-tiled, online-softmax) attention kernel with post-softmax override
# (output_attentions=False path)
# ----------------------------------------------------------------------------
def _attn_flash_kernel(q_ref, k_ref, v_ref, ov_ref, ovm_ref, out_ref,
                       m_sc, l_sc, acc_sc, accov_sc,
                       *, tq, tk, ov_len, approx_recip):
    qt = pl.program_id(1)
    kv = pl.program_id(2)
    q0 = qt * tq
    kv0 = kv * tk

    @pl.when(kv == 0)
    def _init():
        m_sc[...] = jnp.full_like(m_sc, _NEG_BIG)
        l_sc[...] = jnp.zeros_like(l_sc)
        acc_sc[...] = jnp.zeros_like(acc_sc)
        accov_sc[...] = jnp.zeros_like(accov_sc)

    ov_on = jnp.logical_and(q0 < ov_len, kv0 < ov_len)

    # ---- softmax part: skip fully-causally-masked key tiles ----------------
    @pl.when(kv0 <= q0 + tq - 1)
    def _softmax_step():
        q = q_ref[...]
        k = k_ref[...]
        v = v_ref[...]
        s = lax.dot_general(
            q, k, (((1,), (1,)), ((), ())), preferred_element_type=jnp.float32
        )                                                        # [TQ, TK]
        row = q0 + lax.broadcasted_iota(jnp.int32, (tq, tk), 0)
        col = kv0 + lax.broadcasted_iota(jnp.int32, (tq, tk), 1)
        s = jnp.where(col <= row, s, _NEG_BIG)

        m_prev = m_sc[...]
        m_new = jnp.maximum(m_prev, jnp.max(s, axis=-1, keepdims=True))
        alpha = jnp.exp(m_prev - m_new)
        p = jnp.exp(s - m_new)

        # Denominator sums over ALL keys (override replaces weights AFTER the
        # softmax, it does not re-normalize).
        l_sc[...] = alpha * l_sc[...] + jnp.sum(p, axis=-1, keepdims=True)

        # Overridden positions are removed from the softmax @ V accumulation.
        drop = jnp.logical_and(ovm_ref[...] != 0, ov_on)
        p = jnp.where(drop, 0.0, p)
        acc_sc[...] = alpha * acc_sc[...] + jnp.dot(
            p.astype(v.dtype), v, preferred_element_type=jnp.float32
        )
        m_sc[...] = m_new

    # ---- override part: NOT causal-gated (matches PyTorch semantics) -------
    @pl.when(ov_on)
    def _override_step():
        v = v_ref[...]
        ovv = jnp.where(ovm_ref[...] != 0, ov_ref[...], 0.0)
        accov_sc[...] += jnp.dot(
            ovv.astype(v.dtype), v, preferred_element_type=jnp.float32
        )

    @pl.when(kv == pl.num_programs(2) - 1)
    def _finalize():
        inv = pl.reciprocal(l_sc[...], approx=approx_recip)
        out_ref[...] = (acc_sc[...] * inv + accov_sc[...]).astype(out_ref.dtype)


def _flash_tiles(s):
    tk = None
    for cand in (512, 256, 128):
        if s % cand == 0 and s // cand >= 2:
            tk = cand
            break
    if tk is None:
        return None
    tq_target = 256 if _vmem_capacity_bytes() >= 100 * 1024 * 1024 else 128
    tq = tq_target if s % tq_target == 0 else 128
    return tq, tk


def attention_flash(q, k, v, ov, ovm, *, num_heads, tq, tk, merged_out,
                    out_dtype, approx_recip):
    bh, s, d = q.shape
    l = ov.shape[-1]
    lq_pad = _round_up(l, tq)
    lk_pad = _round_up(l, tk)
    ov_p = jnp.pad(ov, ((0, 0), (0, lq_pad - l), (0, lk_pad - l))).astype(q.dtype)
    ovm_p = jnp.pad(ovm.astype(jnp.int8), ((0, 0), (0, lq_pad - l), (0, lk_pad - l)))
    nq_ov = lq_pad // tq
    nk_ov = lk_pad // tk
    h = num_heads

    kernel = functools.partial(
        _attn_flash_kernel, tq=tq, tk=tk, ov_len=l, approx_recip=approx_recip
    )

    in_specs = [
        pl.BlockSpec((_SQ, tq, d), lambda i, qt, kv: (i, qt, 0)),
        pl.BlockSpec((_SQ, tk, d), lambda i, qt, kv: (i, kv, 0)),
        pl.BlockSpec((_SQ, tk, d), lambda i, qt, kv: (i, kv, 0)),
        pl.BlockSpec((_SQ, tq, tk),
                     lambda i, qt, kv: (i, jnp.minimum(qt, nq_ov - 1),
                                        jnp.minimum(kv, nk_ov - 1))),
        pl.BlockSpec((_SQ, tq, tk),
                     lambda i, qt, kv: (i, jnp.minimum(qt, nq_ov - 1),
                                        jnp.minimum(kv, nk_ov - 1))),
    ]

    if merged_out:
        b = bh // h
        out_shape = jax.ShapeDtypeStruct((b, s, h * d), out_dtype)
        out_specs = pl.BlockSpec((_SQ, tq, d), lambda i, qt, kv: (i // h, qt, i % h))
    else:
        out_shape = jax.ShapeDtypeStruct((bh, s, d), out_dtype)
        out_specs = pl.BlockSpec((_SQ, tq, d), lambda i, qt, kv: (i, qt, 0))

    return pl.pallas_call(
        kernel,
        out_shape=out_shape,
        grid_spec=pltpu.PrefetchScalarGridSpec(
            num_scalar_prefetch=0,
            grid=(bh, s // tq, s // tk),
            in_specs=in_specs,
            out_specs=out_specs,
            scratch_shapes=[
                pltpu.VMEM((tq, 1), jnp.float32),   # running max
                pltpu.VMEM((tq, 1), jnp.float32),   # running denom
                pltpu.VMEM((tq, d), jnp.float32),   # softmax @ V accumulator
                pltpu.VMEM((tq, d), jnp.float32),   # override @ V accumulator
            ],
        ),
        compiler_params=pltpu.CompilerParams(
            dimension_semantics=("parallel", "arbitrary", "arbitrary"),
            vmem_limit_bytes=_vmem_limit_bytes(),
        ),
    )(q, k, v, ov_p, ovm_p)


# ----------------------------------------------------------------------------
# GPT-J rotary embedding helpers (plain-JAX layout glue)
# ----------------------------------------------------------------------------
def create_sinusoidal_positions(num_pos, dim):
    inv_freq = 1.0 / (10000.0 ** (jnp.arange(0, dim, 2, dtype=jnp.float32) / dim))
    sinusoid_inp = jnp.einsum(
        "i,j->ij", jnp.arange(num_pos, dtype=jnp.float32), inv_freq
    )
    return jnp.concatenate([jnp.sin(sinusoid_inp), jnp.cos(sinusoid_inp)], axis=1)


def rotate_every_two(x):
    x1 = x[..., ::2]
    x2 = x[..., 1::2]
    y = jnp.stack((-x2, x1), axis=-1)
    return y.reshape(x.shape)


def apply_rotary_pos_emb(tensor, sin, cos):
    # tensor: [B, S, H, rot], sin/cos: [B, S, rot//2]
    sin = jnp.repeat(sin[:, :, None, :], 2, axis=3)
    cos = jnp.repeat(cos[:, :, None, :], 2, axis=3)
    return tensor * cos + rotate_every_two(tensor) * sin


# ----------------------------------------------------------------------------
# Forward pass (mirrors OverrideGPTJAttention.forward, eval mode, no cache,
# no attention_mask / head_mask / layer_past)
# ----------------------------------------------------------------------------
def override_gptj_attention_forward(
    hidden_states,       # [B, S, E] float32
    params,              # dict: q_w, k_w, v_w, out_w each [E, E] (PyTorch [out,in])
    attn_override,       # [B, H, L, L] float32
    attn_override_mask,  # [B, H, L, L] bool
    position_ids,        # [B, S] int32
    num_heads,
    rotary_dim,
    max_positions=2048,
    output_attentions=False,
    compute_dtype=jnp.bfloat16,      # None -> exact fp32 everywhere
    attn_weights_dtype=jnp.float32,
):
    b, s, e = hidden_states.shape
    assert e % num_heads == 0
    head_dim = e // num_heads
    inv_scale = 1.0 / (float(head_dim) ** 0.5)

    # Pre-transpose once and fuse q/k/v into a single [E, 3E] weight slab.
    wqkv_t = jnp.concatenate(
        [params["q_w"].T, params["k_w"].T, params["v_w"].T], axis=1
    )
    wout_t = params["out_w"].T

    x2d = hidden_states.reshape(b * s, e)
    qkv = matmul(x2d, wqkv_t, compute_dtype=compute_dtype)     # [B*S, 3E] fp32
    query, key, value = jnp.split(qkv, 3, axis=-1)

    # _split_heads: rotary=True -> [B,S,H,D]; value (rotary=False) -> [B,H,S,D]
    query = query.reshape(b, s, num_heads, head_dim)
    key = key.reshape(b, s, num_heads, head_dim)
    value = value.reshape(b, s, num_heads, head_dim).transpose(0, 2, 1, 3)

    embed_positions = create_sinusoidal_positions(max_positions, rotary_dim)
    sincos = embed_positions[position_ids]                     # [B, S, rot]
    sin, cos = jnp.split(sincos, 2, axis=-1)

    # TODO(synk): fuse rotary (pltpu.roll) + head split into the attention
    # kernel prologue; kept in plain JAX for generality at odd head_dim/rot.
    k_rot = apply_rotary_pos_emb(key[..., :rotary_dim], sin, cos)
    q_rot = apply_rotary_pos_emb(query[..., :rotary_dim], sin, cos)
    key = jnp.concatenate([k_rot, key[..., rotary_dim:]], axis=-1)
    query = jnp.concatenate([q_rot, query[..., rotary_dim:]], axis=-1)

    key = key.transpose(0, 2, 1, 3)       # [B, H, S, D]
    query = query.transpose(0, 2, 1, 3)   # [B, H, S, D]

    # Fold 1/scale into q; cast attention operands to the MXU compute dtype.
    q_s = query * inv_scale
    if compute_dtype is not None:
        q_s = q_s.astype(compute_dtype)
        key = key.astype(compute_dtype)
        value = value.astype(compute_dtype)

    bh = b * num_heads
    l = attn_override_mask.shape[-1]
    qf = q_s.reshape(bh, s, head_dim)
    kf = key.reshape(bh, s, head_dim)
    vf = value.reshape(bh, s, head_dim)
    ovf = attn_override.astype(jnp.float32).reshape(bh, l, l)
    ovmf = attn_override_mask.reshape(bh, l, l)

    merged_out = (head_dim % 128 == 0)
    ctx_dtype = compute_dtype if compute_dtype is not None else jnp.float32
    approx_recip = compute_dtype is not None

    flash_tiles = None if output_attentions else _flash_tiles(s)
    if flash_tiles is not None:
        tq, tk = flash_tiles
        ctx = attention_flash(
            qf, kf, vf, ovf, ovmf, num_heads=num_heads, tq=tq, tk=tk,
            merged_out=merged_out, out_dtype=ctx_dtype, approx_recip=approx_recip,
        )
        attn_weights = None
    else:
        ctx, attn_weights = attention_full(
            qf, kf, vf, ovf, ovmf, num_heads=num_heads, merged_out=merged_out,
            out_dtype=ctx_dtype, output_attentions=output_attentions,
            approx_recip=approx_recip, attn_weights_dtype=attn_weights_dtype,
        )

    if merged_out:
        ctx2d = ctx.reshape(b * s, e)                      # already merged layout
    else:
        ctx2d = (ctx.reshape(b, num_heads, s, head_dim)
                 .transpose(0, 2, 1, 3).reshape(b * s, e))  # _merge_heads fallback

    out = matmul(ctx2d, wout_t, out_dtype=hidden_states.dtype,
                 compute_dtype=compute_dtype).reshape(b, s, e)

    if attn_weights is not None:
        attn_weights = attn_weights.reshape(b, num_heads, s, s)

    # TODO(synk): layer_past / use_cache, attention_mask, head_mask and dropout
    # (train mode) paths are not modeled; eval-mode no-cache forward only.
    return out, attn_weights


# ----------------------------------------------------------------------------
# Pure-JAX reference for sanity checking
# ----------------------------------------------------------------------------
def _reference(hidden_states, params, attn_override, attn_override_mask,
               position_ids, num_heads, rotary_dim, max_positions=2048):
    b, s, e = hidden_states.shape
    d = e // num_heads
    q = hidden_states @ params["q_w"].T
    k = hidden_states @ params["k_w"].T
    v = hidden_states @ params["v_w"].T
    q = q.reshape(b, s, num_heads, d)
    k = k.reshape(b, s, num_heads, d)
    v = v.reshape(b, s, num_heads, d).transpose(0, 2, 1, 3)
    sincos = create_sinusoidal_positions(max_positions, rotary_dim)[position_ids]
    sin, cos = jnp.split(sincos, 2, axis=-1)
    k = jnp.concatenate(
        [apply_rotary_pos_emb(k[..., :rotary_dim], sin, cos), k[..., rotary_dim:]], -1
    ).transpose(0, 2, 1, 3)
    q = jnp.concatenate(
        [apply_rotary_pos_emb(q[..., :rotary_dim], sin, cos), q[..., rotary_dim:]], -1
    ).transpose(0, 2, 1, 3)
    w = jnp.einsum("bhqd,bhkd->bhqk", q, k)
    causal = jnp.tril(jnp.ones((s, s), bool))[None, None]
    w = jnp.where(causal, w, jnp.finfo(jnp.float32).min) / jnp.sqrt(jnp.float32(d))
    w = jax.nn.softmax(w, axis=-1)
    l = attn_override_mask.shape[-1]
    w = w.at[:, :, :l, :l].set(
        jnp.where(attn_override_mask, attn_override, w[:, :, :l, :l])
    )
    o = jnp.einsum("bhqk,bhkd->bhqd", w, v).transpose(0, 2, 1, 3).reshape(b, s, e)
    return o @ params["out_w"].T, w


# ----------------------------------------------------------------------------
def _run_case(name, key, B, S, E, H, ROT, L, compute_dtype,
              tol_out, tol_w):
    ks = jax.random.split(key, 7)
    hidden_states = jax.random.normal(ks[0], (B, S, E), jnp.float32)
    params = {
        "q_w": 0.02 * jax.random.normal(ks[1], (E, E), jnp.float32),
        "k_w": 0.02 * jax.random.normal(ks[2], (E, E), jnp.float32),
        "v_w": 0.02 * jax.random.normal(ks[3], (E, E), jnp.float32),
        "out_w": 0.02 * jax.random.normal(ks[4], (E, E), jnp.float32),
    }
    attn_override = jax.random.uniform(ks[5], (B, H, L, L), jnp.float32)
    attn_override_mask = jax.random.bernoulli(ks[6], 0.5, (B, H, L, L))
    position_ids = jnp.tile(jnp.arange(S, dtype=jnp.int32)[None, :], (B, 1))

    ref_out, ref_w = _reference(
        hidden_states, params, attn_override, attn_override_mask,
        position_ids, H, ROT,
    )

    # Path 1: output_attentions=True (full-key kernel, weights writeback).
    out, w = override_gptj_attention_forward(
        hidden_states, params, attn_override, attn_override_mask,
        position_ids, num_heads=H, rotary_dim=ROT,
        output_attentions=True, compute_dtype=compute_dtype,
    )
    out = jax.block_until_ready(out)
    w = jax.block_until_ready(w)
    assert bool(jnp.allclose(out, ref_out, atol=tol_out, rtol=tol_out)), \
        f"{name}: context mismatch (output_attentions=True)"
    assert bool(jnp.allclose(w, ref_w, atol=tol_w, rtol=tol_w)), \
        f"{name}: attention weights mismatch"

    # Path 2: output_attentions=False (flash kernel when S allows it).
    out2, w2 = override_gptj_attention_forward(
        hidden_states, params, attn_override, attn_override_mask,
        position_ids, num_heads=H, rotary_dim=ROT,
        output_attentions=False, compute_dtype=compute_dtype,
    )
    out2 = jax.block_until_ready(out2)
    assert w2 is None
    assert bool(jnp.allclose(out2, ref_out, atol=tol_out, rtol=tol_out)), \
        f"{name}: context mismatch (output_attentions=False)"


if __name__ == "__main__":
    root = jax.random.PRNGKey(0)
    k1, k2, k3 = jax.random.split(root, 3)

    # 1) Tiny shapes, exact fp32 path (full-key kernel, non-merged output).
    _run_case("tiny_fp32", k1, B=2, S=8, E=32, H=4, ROT=4, L=6,
              compute_dtype=None, tol_out=1e-5, tol_w=1e-5)

    # 2) head_dim=128: merged-layout output + flash (key-tiled) kernel, bf16 MXU.
    _run_case("merged_bf16", k2, B=1, S=512, E=256, H=2, ROT=64, L=200,
              compute_dtype=jnp.bfloat16, tol_out=1e-1, tol_w=2e-2)

    # 3) head_dim=64: non-merged flash path, bf16 MXU.
    _run_case("flash_bf16", k3, B=2, S=256, E=128, H=2, ROT=32, L=100,
              compute_dtype=jnp.bfloat16, tol_out=1e-1, tol_w=2e-2)

    print("KERNEL_OK")
</pallas_src>

<mosaic_0001>
module attributes {stable_mosaic.version = 11 : i64} {
  func.func @_matmul_kernel(%arg0: i32, %arg1: i32, %arg2: i32, %arg3: memref<16x32xf32, #tpu.memory_space<vmem>>, %arg4: memref<32x96xf32, #tpu.memory_space<vmem>>, %arg5: memref<16x96xf32, #tpu.memory_space<vmem>>, %arg6: memref<16x96xf32, #tpu.memory_space<vmem>>) attributes {dimension_semantics = [#tpu.dimension_semantics<parallel>, #tpu.dimension_semantics<parallel>, #tpu.dimension_semantics<arbitrary>], iteration_bounds = array<i64: 1, 1, 1>, scalar_prefetch = 0 : i64, scratch_operands = 1 : i64, tpu.core_type = #tpu.core_type<tc>, window_params = [{transform_indices = @transform_0, window_bounds = array<i64: 16, 32>}, {transform_indices = @transform_1, window_bounds = array<i64: 32, 96>}, {transform_indices = @transform_2, window_bounds = array<i64: 16, 96>}]} {
    %c0_i32 = arith.constant 0 : i32
    %0 = arith.cmpi eq, %arg2, %c0_i32 : i32
    %1 = arith.extui %0 : i1 to i32
    %c0_i32_0 = arith.constant 0 : i32
    %2 = arith.cmpi ne, %1, %c0_i32_0 : i32
    scf.if %2 {
      %cst_10 = arith.constant 0.000000e+00 : f32
      %12 = vector.broadcast %cst_10 : f32 to vector<16x96xf32>
      %c0_11 = arith.constant 0 : index
      %c0_12 = arith.constant 0 : index
      %13 = vector.load %arg6[%c0_11, %c0_12] : memref<16x96xf32, #tpu.memory_space<vmem>>, vector<16x96xf32>
      tpu.vector_store %arg6[%c0_11, %c0_12], %12 {strides = array<i32>} : memref<16x96xf32, #tpu.memory_space<vmem>>, vector<16x96xf32>,
    } else {
    }
    %c0 = arith.constant 0 : index
    %c0_1 = arith.constant 0 : index
    %3 = vector.load %arg6[%c0, %c0_1] : memref<16x96xf32, #tpu.memory_space<vmem>>, vector<16x96xf32>
    %c0_2 = arith.constant 0 : index
    %c0_3 = arith.constant 0 : index
    %4 = vector.load %arg3[%c0_2, %c0_3] : memref<16x32xf32, #tpu.memory_space<vmem>>, vector<16x32xf32>
    %c0_4 = arith.constant 0 : index
    %c0_5 = arith.constant 0 : index
    %5 = vector.load %arg4[%c0_4, %c0_5] : memref<32x96xf32, #tpu.memory_space<vmem>>, vector<32x96xf32>
    %cst = arith.constant dense<0.000000e+00> : vector<16x96xf32>
    %6 = tpu.matmul %4, %5, %cst {dimension_numbers = #tpu.dot_dimension_numbers<[1], [0], [0], [1], [0, 0, 1, 1], [], []>} : vector<16x32xf32>, vector<32x96xf32>, vector<16x96xf32> -> vector<16x96xf32>
    %7 = arith.addf %3, %6 : vector<16x96xf32>
    %c0_6 = arith.constant 0 : index
    %c0_7 = arith.constant 0 : index
    %8 = vector.load %arg6[%c0_6, %c0_7] : memref<16x96xf32, #tpu.memory_space<vmem>>, vector<16x96xf32>
    tpu.vector_store %arg6[%c0_6, %c0_7], %7 {strides = array<i32>} : memref<16x96xf32, #tpu.memory_space<vmem>>, vector<16x96xf32>,
    %c0_i32_8 = arith.constant 0 : i32
    %9 = arith.cmpi eq, %arg2, %c0_i32_8 : i32
    %10 = arith.extui %9 : i1 to i32
    %c0_i32_9 = arith.constant 0 : i32
    %11 = arith.cmpi ne, %10, %c0_i32_9 : i32
    scf.if %11 {
      %c0_10 = arith.constant 0 : index
      %c0_11 = arith.constant 0 : index
      %12 = vector.load %arg6[%c0_10, %c0_11] : memref<16x96xf32, #tpu.memory_space<vmem>>, vector<16x96xf32>
      %c0_12 = arith.constant 0 : index
      %c0_13 = arith.constant 0 : index
      %13 = vector.load %arg5[%c0_12, %c0_13] : memref<16x96xf32, #tpu.memory_space<vmem>>, vector<16x96xf32>
      tpu.vector_store %arg5[%c0_12, %c0_13], %12 {strides = array<i32>} : memref<16x96xf32, #tpu.memory_space<vmem>>, vector<16x96xf32>,
    } else {
    }
    return
  }
  func.func @transform_0(%arg0: i32, %arg1: i32, %arg2: i32) -> (i32, i32) {
    %c0_i32 = arith.constant 0 : i32
    return %arg0, %arg2 : i32, i32
  }
  func.func @transform_1(%arg0: i32, %arg1: i32, %arg2: i32) -> (i32, i32) {
    %c0_i32 = arith.constant 0 : i32
    return %arg2, %arg1 : i32, i32
  }
  func.func @transform_2(%arg0: i32, %arg1: i32, %arg2: i32) -> (i32, i32) {
    %c0_i32 = arith.constant 0 : i32
    return %arg0, %arg1 : i32, i32
  }
}

</mosaic_0001>

<bundles_post_ra>
// kernel: tpu_custom_call.1
= control target key start
LH: loop header
LB: loop body
LE: loop exit
PB: predicated region body
PF: predicated region fallthrough
CT: control target
= control target key end

     0   :  { %7 = vsyncpa [#allocation4], 0  ;;  %s344_s0 = inlined_call_operand.hbm [shape: f32[16,32], index: 0, kind: input, shape index: {}]   ;;  %s345_s1 = inlined_call_operand.hbm [shape: f32[32,96], index: 1, kind: input, shape index: {}]   ;;  %s346_s2 = inlined_call_operand.hbm [shape: f32[16,96], index: 2, kind: output, shape index: {}]  }
   0x1   :  { %8 = vsyncpa [#allocation7], 0 }
   0x2   :  { %9 = vsyncpa [#allocation5], 0  ;;  %s272_s9 = smov [#allocation3]   ;;  %s200_s13 = scalar_lea.hbm %s344_s0, 256 }
   0x3   :  { %s15_s10 = sshll.u32 %s272_s9, 4  ;;  %p201_p0 = scmp.ne.s32.totalorder %s344_s0, %s200_s13  ;;  %s16_s10 = int_to_ptr.vmem [resolvable:$true] %s15_s10 }
   0x4   :  { %p204_p1 = scmp.lt.u32.totalorder %s200_s13, %s344_s0 }
   0x6   :  { %p206_p2 = pnand %p204_p1, %p201_p0 }
   0x8   :  { %209 = shalt.err (!%p206_p2)
}
   0x9   :  { %s210_s18 = scalar_lea.vmem %s16_s10, 256  ;;  %p215_p4 = scmp.lt.s32.totalorder %s16_s10, %s16_s10 }
   0xa   :  { %p211_p3 = scmp.ne.s32.totalorder %s16_s10, %s210_s18  ;;  %p216_p5 = scmp.lt.s32.totalorder %s210_s18, %s210_s18 }
   0xc   :  { %p217_p6 = por %p216_p5, %p215_p4 }
   0xe   :  { %p218_p7 = pnand %p217_p6, %p211_p3 }
  0x10   :  { %221 = shalt.err (!%p218_p7)
}
  0x11   :  { %s273_s19 = smov 128   ;;  %s274_s20 = smov 8  }
  0x12   :  { %21 = dma.hbm_to_vmem [thread:$0]  %s344_s0, 256, %s16_s10, [#allocation4], %s273_s19, %s273_s19, %s274_s20  }
  0x13   :  { %s275_s23 = smov [#allocation6]   ;;  %s222_s27 = scalar_lea.hbm %s345_s1, 512 }
  0x14   :  { %s27_s24 = sshll.u32 %s275_s23, 4  ;;  %p223_p8 = scmp.ne.s32.totalorder %s345_s1, %s222_s27  ;;  %s28_s24 = int_to_ptr.vmem [resolvable:$true] %s27_s24 }
  0x15   :  { %p226_p9 = scmp.lt.u32.totalorder %s222_s27, %s345_s1 }
  0x17   :  { %p228_p10 = pnand %p226_p9, %p223_p8 }
  0x19   :  { %231 = shalt.err (!%p228_p10)
}
  0x1a   :  { %s232_s4 = scalar_lea.vmem %s28_s24, 512  ;;  %p237_p12 = scmp.lt.s32.totalorder %s28_s24, %s28_s24 }
  0x1b   :  { %p233_p11 = scmp.ne.s32.totalorder %s28_s24, %s232_s4  ;;  %p238_p13 = scmp.lt.s32.totalorder %s232_s4, %s232_s4 }
  0x1d   :  { %p239_p0 = por %p238_p13, %p237_p12 }
  0x1f   :  { %p240_p1 = pnand %p239_p0, %p233_p11 }
  0x21   :  { %243 = shalt.err (!%p240_p1)
}
  0x22   :  { %33 = dma.hbm_to_vmem [thread:$0]  %s345_s1, 512, %s28_s24, [#allocation7], %s273_s19, %s273_s19, %s274_s20  }
  0x23   :  { %266 = dma.done.wait [#allocation4], 256  }
  0x24   :  { %267 = vsyncadd [#allocation4], 4294967040 }
  0x25   :  { %268 = dma.done.wait [#allocation7], 512  }
  0x26   :  { %269 = vsyncadd [#allocation7], 4294966784  ;;  %vm44_vm0 = vcmask 785408   ;;  %v276_v0 = vmov 0.0   ;;  %vm55_vm1 = vcmask 261120   ;;  %v51_v1 = vld [vmem:[#allocation6] sm:$0xff] }
  0x27   :  { %46 = vst.msk [vmem:[#allocation2 + $0x8] sm:$0xff] %vm44_vm0, %v276_v0  ;;  %45 = vst.msk [vmem:[#allocation2] sm:$0xff] %vm44_vm0, %v276_v0  ;;  %v52_v2 = vld [vmem:[#allocation6 + $0x8] sm:$0xff]  ;;  %v53_v3 = vld [vmem:[#allocation6 + $0x10] sm:$0xff]  ;;  %s277_s1 = smov [#allocation8]  }
  0x28   :  { %v186_v4 = vpack.c.bf16 %v52_v2, %v51_v1  ;;  %v54_v5 = vld [vmem:[#allocation6 + $0x18] sm:$0xff]  ;;  %v49_v6 = vld [vmem:[#allocation3] sm:$0xff]  ;;  %s154_s6 = sshll.u32 %s277_s1, 4  ;;  %s155_s6 = int_to_ptr.vmem [resolvable:$true] %s154_s6 }
  0x29   :  { %v190_v7 = vpack.c.bf16 %v54_v5, %v53_v3  ;;  %183 = vmatprep.mubr.msk.f32.mxu0 %vm55_vm1, %v49_v6  ;;  %v50_v8 = vld [vmem:[#allocation3 + $0x8] sm:$0xff]  ;;  %s244_s7 = scalar_lea.vmem %s155_s6, 256  ;;  %p249_p3 = scmp.lt.s32.totalorder %s155_s6, %s155_s6 }
  0x2a   :  { %187 = vmatprep.subr.bf16.mxu0 %v186_v4  ;;  %p245_p2 = scmp.ne.s32.totalorder %s155_s6, %s244_s7  ;;  %p250_p4 = scmp.lt.s32.totalorder %s244_s7, %s244_s7 }
  0x2b   :  { %189 = vmatpush3.bf16.msra.mxu0 %v186_v4 }
  0x2c   :  { %191 = vmatprep.subr.bf16.mxu0 %v190_v7  ;;  %p251_p5 = por %p250_p4, %p249_p3 }
  0x2e   :  { %v48_v9 = vld [vmem:[#allocation2 + $0x8] sm:$0xff]  ;;  %v47_v10 = vld [vmem:[#allocation2] sm:$0xff]  ;;  %p252_p6 = pnand %p251_p5, %p245_p2 }
  0x2f   :  { %193 = vmatpush3.bf16.msra.mxu0 %v190_v7 }
  0x32   :  { %184 = vmatmul.mubr.msk.f32.vlgmr.msra.gmra.mrb[0].mxu0 %vm55_vm1, %v50_v8 }
 0x105   :  { %v185_v11 = vpop.f32.mrb[0].mxu0 }
 0x106   :  { %v138_v12 = vadd.f32 %v185_v11, %v48_v9  ;;  %v128_v13 = vpop.f32.mrb[1].mxu0 }
 0x107   :  { %v137_v14 = vadd.f32 %v128_v13, %v47_v10 }
 0x108   :  { %141 = vst.msk [vmem:[#allocation2 + $0x8] sm:$0xff] %vm44_vm0, %v138_v12 }
 0x109   :  { %140 = vst.msk [vmem:[#allocation2] sm:$0xff] %vm44_vm0, %v137_v14 }
 0x10f   :  { %v146_v15 = vld [vmem:[#allocation2 + $0x8] sm:$0xff] }
 0x110   :  { %v145_v16 = vld [vmem:[#allocation2] sm:$0xff]  ;;  %148 = vst.msk [vmem:[#allocation8 + $0x8] sm:$0xff] %vm44_vm0, %v146_v15 }
 0x111   :  { %147 = vst.msk [vmem:[#allocation8] sm:$0xff] %vm44_vm0, %v145_v16 }
 0x112   :  { %255 = shalt.err (!%p252_p6)
}
 0x113   :  { %s256_s10 = scalar_lea.hbm %s346_s2, 256 }
 0x114   :  { %p257_p7 = scmp.ne.s32.totalorder %s346_s2, %s256_s10  ;;  %p260_p8 = scmp.lt.u32.totalorder %s256_s10, %s346_s2 }
 0x116   :  { %p262_p9 = pnand %p260_p8, %p257_p7 }
 0x118   :  { %265 = shalt.err (!%p262_p9)
}
 0x119   :  { %160 = dma.vmem_to_hbm [thread:$0]  %s155_s6, 256, %s346_s2, [#allocation5], %s273_s19, %s273_s19, %s274_s20  }
 0x11a   :  { %270 = dma.done.wait [#allocation5], 256  }
 0x11b   :  { %271 = vsyncadd [#allocation5], 4294967040 }
 0x11c   :  { %164 = vsyncpa [#allocation4], 1 }
 0x11d   :  { %165 = vsyncpa [#allocation7], 1 }
 0x11e   :  { %166 = vsyncpa [#allocation5], 1 }

</bundles_post_ra>
